<compile_context>
chip_gen: v5e
topology: v5e:2x2
jax: 0.10.0
libtpu: 0.0.40
codegen_flags: <defaults>
</compile_context>

<pallas_src>
import numpy as np

import jax
import jax.numpy as jnp
from jax.experimental import pallas as pl
from jax.experimental.pallas import tpu as pltpu

WIN_SIZE = 11
WIN_SIGMA = 1.5
DATA_RANGE = 1.0
K1, K2 = 0.01, 0.03
_C1 = (K1 * DATA_RANGE) ** 2
_C2 = (K2 * DATA_RANGE) ** 2


def _gaussian_window(size, sigma):
    coords = np.arange(size, dtype=np.float64) - size // 2
    g = np.exp(-(coords ** 2) / (2.0 * sigma * sigma))
    return (g / g.sum()).astype(np.float32)


_WIN = _gaussian_window(WIN_SIZE, WIN_SIGMA)


def _toeplitz_filters(H, W):
    """Constant banded matrices implementing the VALID separable Gaussian conv."""
    h_out = H - WIN_SIZE + 1
    w_out = W - WIN_SIZE + 1
    kw = np.zeros((W, w_out), np.float32)
    for j in range(w_out):
        kw[j:j + WIN_SIZE, j] = _WIN
    kh = np.zeros((h_out, H), np.float32)
    for i in range(h_out):
        kh[i, i:i + WIN_SIZE] = _WIN
    return jnp.asarray(kw), jnp.asarray(kh)


def _ssim_plane_kernel(x_ref, y_ref, kw_ref, kh_ref, o_ref):
    x = x_ref[0].astype(jnp.float32)        # (H, W)
    y = y_ref[0].astype(jnp.float32)
    kw = kw_ref[...]                        # (W, w_out)
    kh = kh_ref[...]                        # (h_out, H)

    def gfilter(p):
        # Valid separable Gaussian filtering as two MXU matmuls.
        t = jnp.dot(p, kw, preferred_element_type=jnp.float32,
                    precision=jax.lax.Precision.HIGHEST)
        return jnp.dot(kh, t, preferred_element_type=jnp.float32,
                       precision=jax.lax.Precision.HIGHEST)

    mu1 = gfilter(x)
    mu2 = gfilter(y)
    xx = gfilter(x * x)
    yy = gfilter(y * y)
    xy = gfilter(x * y)

    mu1_sq = mu1 * mu1
    mu2_sq = mu2 * mu2
    mu1_mu2 = mu1 * mu2
    s1 = xx - mu1_sq
    s2 = yy - mu2_sq
    s12 = xy - mu1_mu2

    ssim_map = ((2.0 * mu1_mu2 + _C1) * (2.0 * s12 + _C2)) / (
        (mu1_sq + mu2_sq + _C1) * (s1 + s2 + _C2))

    h_out, w_out = ssim_map.shape
    plane_mean = jnp.sum(ssim_map) * (1.0 / float(h_out * w_out))
    # Lane-dense scalar write (broadcast across the 128-lane axis).
    o_ref[...] = jnp.broadcast_to(plane_mean, (1, 1, 128)).astype(jnp.float32)


@jax.jit
def ssim_loss(x, y):
    N, C, H, W = x.shape
    assert H >= WIN_SIZE and W >= WIN_SIZE, "spatial dims must be >= win_size"
    h_out = H - WIN_SIZE + 1
    w_out = W - WIN_SIZE + 1
    nplanes = N * C

    xs = x.reshape(nplanes, H, W)
    ys = y.reshape(nplanes, H, W)
    kw, kh = _toeplitz_filters(H, W)

    per_plane = pl.pallas_call(
        _ssim_plane_kernel,
        out_shape=jax.ShapeDtypeStruct((nplanes, 1, 128), jnp.float32),
        grid_spec=pltpu.PrefetchScalarGridSpec(
            num_scalar_prefetch=0,
            grid=(nplanes,),
            in_specs=[
                pl.BlockSpec((1, H, W), lambda i: (i, 0, 0)),
                pl.BlockSpec((1, H, W), lambda i: (i, 0, 0)),
                pl.BlockSpec((W, w_out), lambda i: (0, 0)),   # resident filter
                pl.BlockSpec((h_out, H), lambda i: (0, 0)),   # resident filter
            ],
            out_specs=pl.BlockSpec((1, 1, 128), lambda i: (i, 0, 0)),
        ),
        compiler_params=pltpu.CompilerParams(
            dimension_semantics=("parallel",),
            vmem_limit_bytes=32 * 1024 * 1024,
        ),
    )(xs, ys, kw, kh)

    ssim_val = jnp.mean(per_plane[:, 0, 0])
    return 1.0 - ssim_val


def ssim_loss_ref(x, y):
    """Pure-JAX reference mirroring the PyTorch module (1 - SSIM)."""
    x = x.astype(jnp.float32)
    y = y.astype(jnp.float32)
    win = jnp.asarray(_WIN)
    h_out = x.shape[2] - WIN_SIZE + 1
    w_out = x.shape[3] - WIN_SIZE + 1

    def gfilter(v):
        acc = sum(v[:, :, :, k:k + w_out] * win[k] for k in range(WIN_SIZE))
        return sum(acc[:, :, k:k + h_out, :] * win[k] for k in range(WIN_SIZE))

    mu1, mu2 = gfilter(x), gfilter(y)
    s1 = gfilter(x * x) - mu1 * mu1
    s2 = gfilter(y * y) - mu2 * mu2
    s12 = gfilter(x * y) - mu1 * mu2
    ssim_map = ((2 * mu1 * mu2 + _C1) / (mu1 * mu1 + mu2 * mu2 + _C1)) * (
        (2 * s12 + _C2) / (s1 + s2 + _C2))
    return 1.0 - jnp.mean(ssim_map)


if __name__ == "__main__":
    key = jax.random.PRNGKey(0)
    kx, ky = jax.random.split(key)
    # channel=3 to match SSIM(channel=3); spatial >= window size (11)
    x = jax.random.uniform(kx, (2, 3, 16, 16), dtype=jnp.float32)
    y = jax.random.uniform(ky, (2, 3, 16, 16), dtype=jnp.float32)

    out = ssim_loss(x, y)
    jax.block_until_ready(out)

    ref = ssim_loss_ref(x, y)
    assert abs(float(out) - float(ref)) < 1e-3, (float(out), float(ref))

    print("KERNEL_OK")
</pallas_src>

<mosaic_0001>
module attributes {stable_mosaic.version = 11 : i64} {
  func.func @_ssim_plane_kernel(%arg0: i32, %arg1: memref<1x16x16xf32, #tpu.memory_space<vmem>>, %arg2: memref<1x16x16xf32, #tpu.memory_space<vmem>>, %arg3: memref<16x6xf32, #tpu.memory_space<vmem>>, %arg4: memref<6x16xf32, #tpu.memory_space<vmem>>, %arg5: memref<1x1x128xf32, #tpu.memory_space<vmem>>) attributes {dimension_semantics = [#tpu.dimension_semantics<parallel>], iteration_bounds = array<i64: 6>, scalar_prefetch = 0 : i64, scratch_operands = 0 : i64, tpu.core_type = #tpu.core_type<tc>, window_params = [{transform_indices = @transform_0, window_bounds = array<i64: 1, 16, 16>}, {transform_indices = @transform_1, window_bounds = array<i64: 1, 16, 16>}, {pipeline_mode = #tpu.pipeline_mode<synchronous>, transform_indices = @transform_2, window_bounds = array<i64: 16, 6>}, {pipeline_mode = #tpu.pipeline_mode<synchronous>, transform_indices = @transform_3, window_bounds = array<i64: 6, 16>}, {transform_indices = @transform_4, window_bounds = array<i64: 1, 1, 128>}]} {
    %c0 = arith.constant 0 : index
    %c0_0 = arith.constant 0 : index
    %c0_1 = arith.constant 0 : index
    %0 = vector.load %arg1[%c0, %c0_0, %c0_1] : memref<1x16x16xf32, #tpu.memory_space<vmem>>, vector<1x16x16xf32>
    %1 = vector.shape_cast %0 : vector<1x16x16xf32> to vector<16x16xf32>
    %c0_2 = arith.constant 0 : index
    %c0_3 = arith.constant 0 : index
    %c0_4 = arith.constant 0 : index
    %2 = vector.load %arg2[%c0_2, %c0_3, %c0_4] : memref<1x16x16xf32, #tpu.memory_space<vmem>>, vector<1x16x16xf32>
    %3 = vector.shape_cast %2 : vector<1x16x16xf32> to vector<16x16xf32>
    %c0_5 = arith.constant 0 : index
    %c0_6 = arith.constant 0 : index
    %4 = vector.load %arg3[%c0_5, %c0_6] : memref<16x6xf32, #tpu.memory_space<vmem>>, vector<16x6xf32>
    %c0_7 = arith.constant 0 : index
    %c0_8 = arith.constant 0 : index
    %5 = vector.load %arg4[%c0_7, %c0_8] : memref<6x16xf32, #tpu.memory_space<vmem>>, vector<6x16xf32>
    %cst = arith.constant dense<0.000000e+00> : vector<16x6xf32>
    %6 = tpu.matmul %1, %4, %cst {dimension_numbers = #tpu.dot_dimension_numbers<[1], [0], [0], [1], [0, 0, 1, 1], [], []>, precision = #tpu.contract_precision<fp32>} : vector<16x16xf32>, vector<16x6xf32>, vector<16x6xf32> -> vector<16x6xf32>
    %cst_9 = arith.constant dense<0.000000e+00> : vector<6x6xf32>
    %7 = tpu.matmul %5, %6, %cst_9 {dimension_numbers = #tpu.dot_dimension_numbers<[1], [0], [0], [1], [0, 0, 1, 1], [], []>, precision = #tpu.contract_precision<fp32>} : vector<6x16xf32>, vector<16x6xf32>, vector<6x6xf32> -> vector<6x6xf32>
    %cst_10 = arith.constant dense<0.000000e+00> : vector<16x6xf32>
    %8 = tpu.matmul %3, %4, %cst_10 {dimension_numbers = #tpu.dot_dimension_numbers<[1], [0], [0], [1], [0, 0, 1, 1], [], []>, precision = #tpu.contract_precision<fp32>} : vector<16x16xf32>, vector<16x6xf32>, vector<16x6xf32> -> vector<16x6xf32>
    %cst_11 = arith.constant dense<0.000000e+00> : vector<6x6xf32>
    %9 = tpu.matmul %5, %8, %cst_11 {dimension_numbers = #tpu.dot_dimension_numbers<[1], [0], [0], [1], [0, 0, 1, 1], [], []>, precision = #tpu.contract_precision<fp32>} : vector<6x16xf32>, vector<16x6xf32>, vector<6x6xf32> -> vector<6x6xf32>
    %10 = arith.mulf %1, %1 : vector<16x16xf32>
    %cst_12 = arith.constant dense<0.000000e+00> : vector<16x6xf32>
    %11 = tpu.matmul %10, %4, %cst_12 {dimension_numbers = #tpu.dot_dimension_numbers<[1], [0], [0], [1], [0, 0, 1, 1], [], []>, precision = #tpu.contract_precision<fp32>} : vector<16x16xf32>, vector<16x6xf32>, vector<16x6xf32> -> vector<16x6xf32>
    %cst_13 = arith.constant dense<0.000000e+00> : vector<6x6xf32>
    %12 = tpu.matmul %5, %11, %cst_13 {dimension_numbers = #tpu.dot_dimension_numbers<[1], [0], [0], [1], [0, 0, 1, 1], [], []>, precision = #tpu.contract_precision<fp32>} : vector<6x16xf32>, vector<16x6xf32>, vector<6x6xf32> -> vector<6x6xf32>
    %13 = arith.mulf %3, %3 : vector<16x16xf32>
    %cst_14 = arith.constant dense<0.000000e+00> : vector<16x6xf32>
    %14 = tpu.matmul %13, %4, %cst_14 {dimension_numbers = #tpu.dot_dimension_numbers<[1], [0], [0], [1], [0, 0, 1, 1], [], []>, precision = #tpu.contract_precision<fp32>} : vector<16x16xf32>, vector<16x6xf32>, vector<16x6xf32> -> vector<16x6xf32>
    %cst_15 = arith.constant dense<0.000000e+00> : vector<6x6xf32>
    %15 = tpu.matmul %5, %14, %cst_15 {dimension_numbers = #tpu.dot_dimension_numbers<[1], [0], [0], [1], [0, 0, 1, 1], [], []>, precision = #tpu.contract_precision<fp32>} : vector<6x16xf32>, vector<16x6xf32>, vector<6x6xf32> -> vector<6x6xf32>
    %16 = arith.mulf %1, %3 : vector<16x16xf32>
    %cst_16 = arith.constant dense<0.000000e+00> : vector<16x6xf32>
    %17 = tpu.matmul %16, %4, %cst_16 {dimension_numbers = #tpu.dot_dimension_numbers<[1], [0], [0], [1], [0, 0, 1, 1], [], []>, precision = #tpu.contract_precision<fp32>} : vector<16x16xf32>, vector<16x6xf32>, vector<16x6xf32> -> vector<16x6xf32>
    %cst_17 = arith.constant dense<0.000000e+00> : vector<6x6xf32>
    %18 = tpu.matmul %5, %17, %cst_17 {dimension_numbers = #tpu.dot_dimension_numbers<[1], [0], [0], [1], [0, 0, 1, 1], [], []>, precision = #tpu.contract_precision<fp32>} : vector<6x16xf32>, vector<16x6xf32>, vector<6x6xf32> -> vector<6x6xf32>
    %19 = arith.mulf %7, %7 : vector<6x6xf32>
    %20 = arith.mulf %9, %9 : vector<6x6xf32>
    %21 = arith.mulf %7, %9 : vector<6x6xf32>
    %22 = arith.subf %12, %19 : vector<6x6xf32>
    %23 = arith.subf %15, %20 : vector<6x6xf32>
    %24 = arith.subf %18, %21 : vector<6x6xf32>
    %cst_18 = arith.constant 2.000000e+00 : f32
    %25 = vector.broadcast %cst_18 : f32 to vector<6x6xf32>
    %26 = arith.mulf %25, %21 : vector<6x6xf32>
    %cst_19 = arith.constant 9.99999974E-5 : f32
    %27 = vector.broadcast %cst_19 : f32 to vector<6x6xf32>
    %28 = arith.addf %26, %27 : vector<6x6xf32>
    %cst_20 = arith.constant 2.000000e+00 : f32
    %29 = vector.broadcast %cst_20 : f32 to vector<6x6xf32>
    %30 = arith.mulf %29, %24 : vector<6x6xf32>
    %cst_21 = arith.constant 8.99999984E-4 : f32
    %31 = vector.broadcast %cst_21 : f32 to vector<6x6xf32>
    %32 = arith.addf %30, %31 : vector<6x6xf32>
    %33 = arith.mulf %28, %32 : vector<6x6xf32>
    %34 = arith.addf %19, %20 : vector<6x6xf32>
    %cst_22 = arith.constant 9.99999974E-5 : f32
    %35 = vector.broadcast %cst_22 : f32 to vector<6x6xf32>
    %36 = arith.addf %34, %35 : vector<6x6xf32>
    %37 = arith.addf %22, %23 : vector<6x6xf32>
    %cst_23 = arith.constant 8.99999984E-4 : f32
    %38 = vector.broadcast %cst_23 : f32 to vector<6x6xf32>
    %39 = arith.addf %37, %38 : vector<6x6xf32>
    %40 = arith.mulf %36, %39 : vector<6x6xf32>
    %41 = arith.divf %33, %40 : vector<6x6xf32>
    %42 = vector.shape_cast %41 : vector<6x6xf32> to vector<1x6x6xf32>
    %cst_24 = arith.constant dense<0.000000e+00> : vector<1xf32>
    %43 = vector.multi_reduction <add>, %42, %cst_24 [1, 2] : vector<1x6x6xf32> to vector<1xf32>
    %44 = vector.shape_cast %43 : vector<1xf32> to vector<1x1x1xf32>
    %45 = vector.extract %44[0, 0, 0] : f32 from vector<1x1x1xf32>
    %cst_25 = arith.constant 0.027777778 : f32
    %46 = arith.mulf %45, %cst_25 : f32
    %47 = vector.broadcast %46 : f32 to vector<1x1x128xf32>
    %c0_26 = arith.constant 0 : index
    %c0_27 = arith.constant 0 : index
    %c0_28 = arith.constant 0 : index
    %48 = vector.load %arg5[%c0_26, %c0_27, %c0_28] : memref<1x1x128xf32, #tpu.memory_space<vmem>>, vector<1x1x128xf32>
    tpu.vector_store %arg5[%c0_26, %c0_27, %c0_28], %47 {strides = array<i32>} : memref<1x1x128xf32, #tpu.memory_space<vmem>>, vector<1x1x128xf32>,
    return
  }
  func.func @transform_0(%arg0: i32) -> (i32, i32, i32) {
    %c0_i32 = arith.constant 0 : i32
    %c0_i32_0 = arith.constant 0 : i32
    %c0_i32_1 = arith.constant 0 : i32
    return %arg0, %c0_i32, %c0_i32_0 : i32, i32, i32
  }
  func.func @transform_1(%arg0: i32) -> (i32, i32, i32) {
    %c0_i32 = arith.constant 0 : i32
    %c0_i32_0 = arith.constant 0 : i32
    %c0_i32_1 = arith.constant 0 : i32
    return %arg0, %c0_i32, %c0_i32_0 : i32, i32, i32
  }
  func.func @transform_2(%arg0: i32) -> (i32, i32) {
    %c0_i32 = arith.constant 0 : i32
    %c0_i32_0 = arith.constant 0 : i32
    %c0_i32_1 = arith.constant 0 : i32
    return %c0_i32, %c0_i32_0 : i32, i32
  }
  func.func @transform_3(%arg0: i32) -> (i32, i32) {
    %c0_i32 = arith.constant 0 : i32
    %c0_i32_0 = arith.constant 0 : i32
    %c0_i32_1 = arith.constant 0 : i32
    return %c0_i32, %c0_i32_0 : i32, i32
  }
  func.func @transform_4(%arg0: i32) -> (i32, i32, i32) {
    %c0_i32 = arith.constant 0 : i32
    %c0_i32_0 = arith.constant 0 : i32
    %c0_i32_1 = arith.constant 0 : i32
    return %arg0, %c0_i32, %c0_i32_0 : i32, i32, i32
  }
}

</mosaic_0001>

<bundles_post_ra>
// kernel: ssim_loss.1
= control target key start
LH: loop header
LB: loop body
LE: loop exit
PB: predicated region body
PF: predicated region fallthrough
CT: control target
= control target key end

     0   :  { %9 = vsyncpa [#allocation3], 0  ;;  %s2862_s0 = inlined_call_operand.hbm [shape: f32[6,16,16], index: 0, kind: input, shape index: {}]   ;;  %s2863_s1 = inlined_call_operand.hbm [shape: f32[6,16,16], index: 1, kind: input, shape index: {}]   ;;  %s2864_s2 = inlined_call_operand.hbm [shape: f32[16,6], index: 2, kind: input, shape index: {}]   ;;  %s2865_s3 = inlined_call_operand.hbm [shape: f32[6,16], index: 3, kind: input, shape index: {}]   ;;  %s2866_s4 = inlined_call_operand.vmem [shape: f32[6,1,128], index: 4, kind: output, shape index: {}]  }
   0x1   :  { %11 = vsyncpa [#allocation3 + $0x1], 0 }
   0x2   :  { %12 = vsyncpa [#allocation5], 0 }
   0x3   :  { %14 = vsyncpa [#allocation5 + $0x1], 0 }
   0x4   :  { %15 = vsyncpa [#allocation8], 0  ;;  %s2515_s15 = smov 0   ;;  %s2517_s16 = smov 0  }
   0x5   :  { %s2519_s17 = smov 0   ;;  %s2521_s18 = smov 0  }
   0x6 LB: > { %s2534_s19 = sadd.s32 4294967295, %s2484_s18   ;;  %p41_p0 = scmp.ne.s32.totalorder %s2476_s16, %s2472_s15  ;;  %s2484_s18 = sphi %s2521_s18, %s2873_s18   ;;  %s2480_s17 = sphi %s2519_s17, %s2872_s17   ;;  %s2476_s16 = sphi %s2517_s16, %s2871_s16   ;;  %s2472_s15 = sphi %s2515_s15, %s2870_s15  }
   0x7   : > { %p42_p1 = scmp.eq.s32.totalorder %s2534_s19, 0  ;;  %p2228_p2 = scmp.ge.s32.totalorder %s2484_s18, 1 }
   0x8   : > { %p146_p3 = scmp.lt.s32.totalorder %s2484_s18, 7  ;;  %s157_s23 = sshll.u32 %s2864_s2, 4  ;;  %s158_s23 = int_to_ptr.hbm [resolvable:$true] %s157_s23 }
   0x9   : > { %p2542_p4 = por %p42_p1, %p41_p0  ;;  %s2486_s25 = smov [#allocation6]  }
   0xa   : > { %p2549_p5 = pnand %p2228_p2, %p146_p3  ;;  %s159_s26 = sshll.u32 %s2486_s25, 4  ;;  %s160_s26 = int_to_ptr.vmem [resolvable:$true] %s159_s26 }
   0xb   : > { %s172_s29 = sshll.u32 %s2865_s3, 4  ;;  %s2487_s30 = smov 128   ;;  %s173_s29 = int_to_ptr.hbm [resolvable:$true] %s172_s29 }
   0xc   : > { %p2261_p6 = pneg %p2549_p5  ;;  %s2488_s5 = smov 8  }
   0xd   : > { %s2489_s6 = smov [#allocation7]   ;;  %s2564_s8 = sadd.s32 1, %s2484_s18  }
   0xe   : > { %p2262_p7 = pnand %p2261_p6, %p42_p1  ;;  %s174_s7 = sshll.u32 %s2489_s6, 4  ;;  %s175_s7 = int_to_ptr.vmem [resolvable:$true] %s174_s7 }
   0xf   : > { %s28_s9 = sadd.s32 1, %s2480_s17  ;;  %s25_s10 = ssub.s32 %s2484_s18, %s2564_s8 }
  0x10   : > { %2264 = dma.hbm_to_vmem [thread:$0]  (!%p2262_p7), %s158_s23, 256, %s160_s26, [#allocation5], %s2487_s30, %s2487_s30, %s2488_s5  }
  0x11   : > { %2267 = dma.hbm_to_vmem [thread:$0]  (!%p2262_p7), %s173_s29, 128, %s175_s7, [#allocation8]  }
  0x12   : > { %p35_p8 = scmp.ne.s32.totalorder %s2480_s17, %s2476_s16  ;;  %p26_p9 = scmp.eq.s32.totalorder %s25_s10, 0 }
  0x13   : > { %p36_p10 = scmp.eq.s32.totalorder %s2484_s18, 0  ;;  %p2277_p11 = scmp.lt.s32.totalorder %s2484_s18, 6 }
  0x14   : > { %s185_s11 = sand.u32 1, %s2480_s17   ;;  %s2245_s14 = sshll.u32 %s2484_s18, 4 }
  0x15   : > { %s2575_s12 = scalar_select %p26_p9, %s2480_s17, %s28_s9  }
  0x16   : > { %p37_p12 = por %p36_p10, %p35_p8  ;;  %s2232_s13 = sshll.u32 %s185_s11, 4 }
  0x17   : > { %s194_s22 = scalar_lea.hbm %s2862_s0, %s2245_s14  ;;  %s189_s25 = scalar_lea.vmem [#allocation2], %s2232_s13 }
  0x18   : > { %s195_s23 = sshll.u32 %s194_s22, 4  ;;  %s197_s26 = sshll.u32 %s189_s25, 4  ;;  %s196_s23 = int_to_ptr.hbm [resolvable:$true] %s195_s23  ;;  %s198_s26 = int_to_ptr.vmem [resolvable:$true] %s197_s26 }
  0x19   : > { %p2581_p13 = pnand %p2277_p11, %p37_p12  ;;  %s216_s6 = scalar_lea.hbm %s2863_s1, %s2245_s14 }
  0x1a   : > { %s211_s7 = scalar_lea.vmem [#allocation4], %s2232_s13  ;;  %s217_s10 = sshll.u32 %s216_s6, 4  ;;  %s218_s10 = int_to_ptr.hbm [resolvable:$true] %s217_s10 }
  0x1b   : > { %s2588_s9 = sshll.u32 %s211_s7, 4  ;;  %s186_s15 = scalar_lea.sflag [#allocation3], %s185_s11  ;;  %s220_s9 = int_to_ptr.vmem [resolvable:$true] %s2588_s9 }
  0x1c   : > { %s2378_s21 = sshra.s32 %s196_s23, 4  ;;  %p2382_p2 = pneg %p2581_p13  ;;  %s2379_s21 = int_to_ptr.hbm [resolvable:$true] %s2378_s21 }
  0x1d   : > { %s2380_s22 = scalar_lea.hbm %s2379_s21, 16  ;;  %s2385_s29 = scalar_lea.hbm %s2862_s0, 96 }
  0x1e   : > { %p2381_p0 = scmp.ne.s32.totalorder %s2379_s21, %s2380_s22  ;;  %p2386_p7 = scmp.lt.s32.totalorder %s2379_s21, %s2862_s0 }
  0x1f   : > { %p2387_p8 = scmp.lt.s32.totalorder %s2385_s29, %s2380_s22 }
  0x20   : > { %p2383_p3 = pnand %p2382_p2, %p2381_p0 }
  0x21   : > { %p2388_p9 = por %p2387_p8, %p2386_p7 }
  0x22   : > { %p2384_p6 = pneg %p2383_p3 }
  0x24   : > { %p2389_p10 = pnand %p2388_p9, %p2384_p6 }
  0x26   : > { %2392 = shalt.err (!%p2389_p10)
}
  0x27   : > { %2271 = dma.hbm_to_vmem [thread:$0]  (!%p2581_p13), %s196_s23, 256, %s198_s26, %s186_s15, %s2487_s30, %s2487_s30, %s2488_s5  }
  0x28   : > { %s207_s11 = sand.u32 1, %s2484_s18   ;;  %s2408_s7 = sshra.s32 %s218_s10, 4  ;;  %s2409_s7 = int_to_ptr.hbm [resolvable:$true] %s2408_s7 }
  0x29   : > { %s208_s6 = scalar_lea.sflag [#allocation5], %s207_s11  ;;  %s2410_s21 = scalar_lea.hbm %s2409_s7, 16 }
  0x2a   : > { %p2411_p11 = scmp.ne.s32.totalorder %s2409_s7, %s2410_s21  ;;  %s2415_s28 = scalar_lea.hbm %s2863_s1, 96 }
  0x2b   : > { %p2416_p3 = scmp.lt.s32.totalorder %s2409_s7, %s2863_s1  ;;  %p2417_p6 = scmp.lt.s32.totalorder %s2415_s28, %s2410_s21 }
  0x2c   : > { %p2413_p12 = pnand %p2411_p11, %p2382_p2 }
  0x2d   : > { %p2418_p7 = por %p2417_p6, %p2416_p3 }
  0x2e   : > { %p2414_p0 = pneg %p2413_p12 }
  0x30   : > { %p2419_p8 = pnand %p2418_p7, %p2414_p0 }
  0x32   : > { %2422 = shalt.err (!%p2419_p8)
}
  0x33   : > { %2274 = dma.hbm_to_vmem [thread:$0]  (!%p2581_p13), %s218_s10, 256, %s220_s9, %s208_s6, %s2487_s30, %s2487_s30, %s2488_s5  }
  0x34   : > { %231 = sbr.rel (%p2549_p5) target bundleno = 1320 (0x528), region = 36  ;;  %s233_s18 = sand.u32 (!%p2549_p5), 1, %s2476_s16  }
  0x35   : > { %s2625_s23 = sshll.u32 (!%p2549_p5), %s233_s18, 4  ;;  %s234_s26 = scalar_lea.sflag (!%p2549_p5), [#allocation3], %s233_s18 }
  0x36   : > { %s237_s15 = scalar_lea.vmem (!%p2549_p5), [#allocation2], %s2625_s23 }
  0x39   : > { %2455 = dma.done.wait (%p2542_p4), %s234_s26, 256  }
  0x3a   : > { %2457 = vsyncadd (%p2542_p4), %s234_s26, 4294967040  ;;  %s243_s30 = sand.u32 1, %s2534_s19   ;;  %s247_s24 = scalar_lea.vmem [#allocation4], %s2625_s23 }
  0x3b   : > { %s244_s5 = scalar_lea.sflag [#allocation5], %s243_s30 }
  0x3c   : > { %2459 = dma.done.wait (%p2542_p4), %s244_s5, 256  }
  0x3d   : > { %2461 = vsyncadd (%p2542_p4), %s244_s5, 4294967040 }
  0x3e   : > { %2463 = dma.done.wait (%p42_p1), [#allocation5], 256  }
  0x3f   : > { %2465 = vsyncadd (%p42_p1), [#allocation5], 4294967040 }
  0x40   : > { %2467 = dma.done.wait (%p42_p1), [#allocation8], 128  }
  0x41   : > { %2469 = vsyncadd (%p42_p1), [#allocation8], 4294967168  ;;  %vm296_vm0 = vcmask 130048   ;;  %v294_v0 = vld [vmem:[#allocation6 + $0x8] sm:$0xff]  ;;  %v293_v1 = vld [vmem:[#allocation6] sm:$0xff]  ;;  %vm2112_vm5 = vcmask 46080  }
  0x42   : > { %v2646_v2 = vld [vmem:[%s237_s15] sm:$0xff]  ;;  %v2648_v3 = vand.u32 4294901760, %v294_v0  ;;  %v2650_v4 = vand.u32 4294901760, %v293_v1  ;;  %v2654_v6 = vld [vmem:[%s237_s15 + $0x8] sm:$0xff]  ;;  %p286_p1 = scmp.lt.s32.totalorder %s2534_s19, 5 }
  0x43   : > { %v298_v5 = vsel %vm296_vm0, %v2646_v2, 0  ;;  %v301_v8 = vsel %vm296_vm0, %v2654_v6, 0  ;;  %v295_v31 = vld [vmem:[#allocation7] sm:$0x3f]  ;;  %v2711_v63 = vld [vmem:[%s247_s24 + $0x8] sm:$0xff] }
  0x44   : > { %v321_v7 = vand.u32 4294901760, %v298_v5  ;;  %v2659_v9 = vsub.f32 %v294_v0, %v2648_v3  ;;  %318 = vmatpush.msra.mxu0 %v2648_v3  ;;  %v2663_v10 = vsub.f32 %v293_v1, %v2650_v4  ;;  %419 = vmatpush.msra.mxu3 %v2648_v3  ;;  %v329_v11 = vand.u32 4294901760, %v301_v8  ;;  %v2701_v50 = vld [vmem:[%s247_s24] sm:$0xff]  ;;  %s2875_s19 = smov (!%p286_p1, %s2534_s19), 5 }
  0x45   : > { %v494_v35 = vsel %vm296_vm0, %v295_v31, 0  ;;  %v656_v57 = vsel %vm296_vm0, %v2701_v50, 0  ;;  %s288_s10 = scalar_lea.vmem %s2866_s4, %s2875_s19 }
  0x46   : > { %v322_v12 = vsub.f32 %v298_v5, %v321_v7  ;;  %389 = vmatpush.msra.mxu2 %v2659_v9  ;;  %320 = vmatpush.msra.mxu0 %v2650_v4  ;;  %v2669_v13 = vand.u32 4294901760, %v2659_v9  ;;  %v2672_v14 = vand.u32 4294901760, %v2663_v10  ;;  %v330_v15 = vsub.f32 %v301_v8, %v329_v11 }
  0x47   : > { %421 = vmatpush.msra.mxu3 %v2650_v4  ;;  %v2691_v36 = vand.u32 4294901760, %v494_v35  ;;  %v679_v60 = vand.u32 4294901760, %v656_v57  ;;  %v659_v8 = vsel %vm296_vm0, %v2711_v63, 0 }
  0x48   : > { %v323_v16 = vand.u32 4294901760, %v322_v12  ;;  %392 = vmatpush.msra.mxu2 %v2663_v10  ;;  %v355_v17 = vsub.f32 %v2659_v9, %v2669_v13  ;;  %v361_v18 = vsub.f32 %v2663_v10, %v2672_v14  ;;  %452 = vmatpush.msrb.mxu0 %v2669_v13  ;;  %v331_v20 = vand.u32 4294901760, %v330_v15 }
  0x49   : > { %395 = vmatmul.f32.vlgmr.msra.gmra.mxu2 %v322_v12  ;;  %v2694_v43 = vsub.f32 %v494_v35, %v2691_v36  ;;  %v680_v1 = vsub.f32 %v656_v57, %v679_v60 }
  0x4a   : > { %v324_v19 = vsub.f32 %v322_v12, %v323_v16  ;;  %425 = vmatmul.f32.vlgmr.msra.gmra.mxu3 %v323_v16  ;;  %v2681_v21 = vand.u32 4294901760, %v355_v17  ;;  %v2683_v22 = vand.u32 4294901760, %v361_v18  ;;  %456 = vmatpush.msrb.mxu0 %v2672_v14  ;;  %v332_v24 = vsub.f32 %v330_v15, %v331_v20 }
  0x4b   : > { %v2697_v47 = vand.u32 4294901760, %v2694_v43  ;;  %v681_v12 = vand.u32 4294901760, %v680_v1 }
  0x4c   : > { %v325_v23 = vand.u32 4294901760, %v324_v19  ;;  %357 = vmatpush.msra.mxu1 %v2681_v21  ;;  %v333_v25 = vand.u32 4294901760, %v332_v24 }
  0x4d   : > { %v517_v54 = vsub.f32 %v2694_v43, %v2697_v47  ;;  %v682_v17 = vsub.f32 %v680_v1, %v681_v12 }
  0x4e   : > { %326 = vmatmul.f32.vlgmr.msra.gmra.mxu0 %v325_v23  ;;  %363 = vmatpush.msra.mxu1 %v2683_v22 }
  0x4f   : > { %365 = vmatmul.f32.vlgmr.msra.gmra.mxu1 %v321_v7  ;;  %v2707_v59 = vand.u32 4294901760, %v517_v54  ;;  %v683_v19 = vand.u32 4294901760, %v682_v17 }
  0x50   : > { %481 = vmatpush.msrb.mxu1 %v2648_v3 }
  0x51   : > { %400 = vmatmul.f32.gmra.mxu2 %v330_v15  ;;  %v687_v15 = vand.u32 4294901760, %v659_v8 }
  0x52   : > { %431 = vmatmul.f32.gmra.mxu3 %v331_v20  ;;  %483 = vmatpush.msrb.mxu1 %v2650_v4 }
  0x53   : > { %v688_v18 = vsub.f32 %v659_v8, %v687_v15 }
  0x55   : > { %v689_v20 = vand.u32 4294901760, %v688_v18 }
  0x56   : > { %334 = vmatmul.f32.gmra.mxu0 %v333_v25 }
  0x57   : > { %369 = vmatmul.f32.gmra.mxu1 %v329_v11  ;;  %v690_v23 = vsub.f32 %v688_v18, %v689_v20 }
  0x59   : > { %v691_v24 = vand.u32 4294901760, %v690_v23 }
  0x5e   : > { %458 = vmatmul.f32.vlgmr.msrb.gmra.mxu0 %v321_v7 }
  0x5f   : > { %485 = vmatmul.f32.vlgmr.msrb.gmra.mxu1 %v321_v7 }
  0x66   : > { %462 = vmatmul.f32.gmra.mxu0 %v329_v11 }
  0x67   : > { %489 = vmatmul.f32.gmra.mxu1 %v329_v11 }
  0xcb   : > { %v327_v26 = vpop.f32.mrf.mxu0 }
  0xcc   : > { %v366_v27 = vpop.f32.mrf.mxu1  ;;  %v396_v28 = vpop.f32.mrf.mxu2 }
  0xcd   : > { %v367_v29 = vadd.f32 %v366_v27, %v327_v26  ;;  %v426_v32 = vpop.f32.mrf.mxu3 }
  0xcf   : > { %v397_v34 = vadd.f32 %v396_v28, %v367_v29 }
  0xd1   : > { %v427_v37 = vadd.f32 %v426_v32, %v397_v34 }
  0xd3   : > { %v335_v30 = vpop.f32.mrf.mxu0 }
  0xd4   : > { %v370_v33 = vpop.f32.mrf.mxu1  ;;  %v401_v39 = vpop.f32.mrf.mxu2 }
  0xd5   : > { %v371_v38 = vadd.f32 %v370_v33, %v335_v30  ;;  %v432_v46 = vpop.f32.mrf.mxu3 }
  0xd7   : > { %v402_v44 = vadd.f32 %v401_v39, %v371_v38 }
  0xd9   : > { %v433_v48 = vadd.f32 %v432_v46, %v402_v44 }
  0xdb   : > { %v459_v40 = vpop.f32.mrf.mxu0 }
  0xdc   : > { %v460_v41 = vadd.f32 %v459_v40, %v427_v37  ;;  %v486_v42 = vpop.f32.mrf.mxu1 }
  0xde   : > { %v487_v45 = vadd.f32 %v486_v42, %v460_v41 }
  0xe0   : > { %v512_v49 = vand.u32 4294901760, %v487_v45 }
  0xe2   : > { %v544_v55 = vsub.f32 %v487_v45, %v512_v49 }
  0xe3   : > { %v463_v51 = vpop.f32.mrf.mxu0 }
  0xe4   : > { %v464_v52 = vadd.f32 %v463_v51, %v433_v48  ;;  %v490_v53 = vpop.f32.mrf.mxu1  ;;  %v545_v62 = vand.u32 4294901760, %v544_v55 }
  0xe6   : > { %v491_v56 = vadd.f32 %v490_v53, %v464_v52  ;;  %v546_v7 = vsub.f32 %v544_v55, %v545_v62 }
  0xe8   : > { %v510_v58 = vand.u32 4294901760, %v491_v56  ;;  %v547_v16 = vand.u32 4294901760, %v546_v7 }
  0xea   : > { %v538_v61 = vsub.f32 %v491_v56, %v510_v58  ;;  %511 = vmatpush.msrb.mxu2 %v510_v58  ;;  %647 = vmatpush.msra.mxu1 %v510_v58 }
  0xec   : > { %v539_v0 = vand.u32 4294901760, %v538_v61  ;;  %513 = vmatpush.msrb.mxu2 %v512_v49  ;;  %649 = vmatpush.msra.mxu1 %v512_v49 }
  0xed   : > { %519 = vmatmul.f32.vlgmr.msrb.gmra.mxu2 %v2707_v59  ;;  %651 = vmatmul.f32.vlgmr.msra.gmra.mxu1 %v2691_v36 }
  0xee   : > { %570 = vmatpush.msra.mxu2 %v538_v61  ;;  %622 = vmatpush.msra.mxu0 %v539_v0  ;;  %v540_v5 = vsub.f32 %v538_v61, %v539_v0 }
  0xef   : > { %777 = vmatpush.msrb.mxu1 %v2648_v3 }
  0xf0   : > { %573 = vmatpush.msra.mxu2 %v544_v55  ;;  %626 = vmatpush.msra.mxu0 %v545_v62  ;;  %v541_v11 = vand.u32 4294901760, %v540_v5 }
  0xf1   : > { %628 = vmatmul.f32.vlgmr.msra.gmra.mxu0 %v2691_v36  ;;  %779 = vmatpush.msrb.mxu1 %v2650_v4 }
  0xf2   : > { %676 = vmatpush.msrb.mxu2 %v2648_v3  ;;  %542 = vmatpush.msrb.mxu3 %v541_v11 }
  0xf3   : > { %747 = vmatpush.msrb.mxu0 %v2659_v9 }
  0xf4   : > { %678 = vmatpush.msrb.mxu2 %v2650_v4  ;;  %548 = vmatpush.msrb.mxu3 %v547_v16  ;;  %v1011_v16 = vmul.f32 %v2654_v6, %v2654_v6 }
  0xf5   : > { %750 = vmatpush.msrb.mxu0 %v2663_v10  ;;  %550 = vmatmul.f32.vlgmr.msrb.gmra.mxu3 %v2691_v36 }
  0xf6   : > { %576 = vmatmul.f32.vlgmr.msra.gmra.mxu2 %v2694_v43  ;;  %595 = vmatpush.msra.mxu3 %v510_v58  ;;  %v1010_v58 = vmul.f32 %v2646_v2, %v2646_v2  ;;  %v1016_v23 = vsel %vm296_vm0, %v1011_v16, 0 }
  0xf7   : > { %810 = vmatpush.msra.mxu2 %v2669_v13  ;;  %783 = vmatmul.f32.vlgmr.msrb.gmra.mxu1 %v681_v12 }
  0xf8   : > { %597 = vmatpush.msra.mxu3 %v512_v49 }
  0xf9   : > { %814 = vmatpush.msra.mxu2 %v2672_v14  ;;  %753 = vmatmul.f32.vlgmr.msrb.gmra.mxu0 %v680_v1  ;;  %v1013_v1 = vsel %vm296_vm0, %v1010_v58, 0 }
  0xfa   : > { %715 = vmatpush.msrb.mxu3 %v2681_v21  ;;  %v1036_v11 = vand.u32 4294901760, %v1013_v1 }
  0xfc   : > { %721 = vmatpush.msrb.mxu3 %v2683_v22 }
  0xfd   : > { %601 = vmatmul.f32.vlgmr.msra.gmra.mxu3 %v2697_v47 }
  0xfe   : > { %684 = vmatmul.f32.vlgmr.msrb.gmra.mxu2 %v683_v19  ;;  %839 = vmatpush.msra.mxu3 %v2648_v3 }
  0xff   : > { %789 = vmatmul.f32.gmra.mxu1 %v689_v20 }
 0x100   : > { %841 = vmatpush.msra.mxu3 %v2650_v4 }
 0x101   : > { %758 = vmatmul.f32.gmra.mxu0 %v688_v18  ;;  %v1037_v18 = vsub.f32 %v1013_v1, %v1036_v11 }
 0x105   : > { %723 = vmatmul.f32.vlgmr.msrb.gmra.mxu3 %v679_v60 }
 0x106   : > { %692 = vmatmul.f32.gmra.mxu2 %v691_v24 }
 0x10d   : > { %727 = vmatmul.f32.gmra.mxu3 %v687_v15 }
 0x10e   : > { %816 = vmatmul.f32.vlgmr.msra.gmra.mxu2 %v679_v60 }
 0x115   : > { %843 = vmatmul.f32.vlgmr.msra.gmra.mxu3 %v679_v60 }
 0x116   : > { %820 = vmatmul.f32.gmra.mxu2 %v687_v15 }
 0x11d   : > { %847 = vmatmul.f32.gmra.mxu3 %v687_v15 }
 0x16a   : > { %v652_v34 = vpop.f32.mrf.mxu1 }
 0x16e   : > { %v629_v30 = vpop.f32.mrf.mxu0 }
 0x170   : > { %v520_v25 = vpop.f32.mrf.mxu2 }
 0x174   : > { %v784_v42 = vpop.f32.mrf.mxu1 }
 0x176   : > { %v754_v40 = vpop.f32.mrf.mxu0 }
 0x178   : > { %v551_v26 = vpop.f32.mrf.mxu3 }
 0x179   : > { %v577_v27 = vpop.f32.mrf.mxu2  ;;  %v552_v28 = vadd.f32 %v551_v26, %v520_v25  ;;  %v1038_v25 = vand.u32 4294901760, %v1037_v18  ;;  %v1044_v26 = vand.u32 4294901760, %v1016_v23 }
 0x17b   : > { %v578_v29 = vadd.f32 %v577_v27, %v552_v28  ;;  %v1039_v28 = vsub.f32 %v1037_v18, %v1038_v25 }
 0x17c   : > { %v790_v56 = vpop.f32.mrf.mxu1 }
 0x17e   : > { %v759_v51 = vpop.f32.mrf.mxu0 }
 0x180   : > { %v602_v31 = vpop.f32.mrf.mxu3 }
 0x181   : > { %v685_v32 = vpop.f32.mrf.mxu2  ;;  %v603_v33 = vadd.f32 %v602_v31, %v578_v29  ;;  %v1045_v29 = vsub.f32 %v1016_v23, %v1044_v26 }
 0x183   : > { %v630_v35 = vadd.f32 %v629_v30, %v603_v33  ;;  %v1040_v30 = vand.u32 4294901760, %v1039_v28  ;;  %v1046_v31 = vand.u32 4294901760, %v1045_v29 }
 0x185   : > { %v2733_v37 = vadd.f32 %v652_v34, %v630_v35 }
 0x188   : > { %v724_v39 = vpop.f32.mrf.mxu3 }
 0x189   : > { %v693_v38 = vpop.f32.mrf.mxu2  ;;  %v725_v41 = vadd.f32 %v724_v39, %v685_v32  ;;  %v1047_v32 = vsub.f32 %v1045_v29, %v1046_v31 }
 0x18b   : > { %v755_v45 = vadd.f32 %v754_v40, %v725_v41  ;;  %v1048_v33 = vand.u32 4294901760, %v1047_v32 }
 0x18d   : > { %v785_v48 = vadd.f32 %v784_v42, %v755_v45 }
 0x190   : > { %v728_v44 = vpop.f32.mrf.mxu3 }
 0x191   : > { %v817_v46 = vpop.f32.mrf.mxu2  ;;  %v729_v49 = vadd.f32 %v728_v44, %v693_v38 }
 0x192   : > { %v818_v52 = vadd.f32 %v817_v46, %v785_v48 }
 0x193   : > { %v760_v54 = vadd.f32 %v759_v51, %v729_v49  ;;  %v2761_v51 = vmul.f32 %v2733_v37, %v2733_v37 }
 0x195   : > { %v791_v60 = vadd.f32 %v790_v56, %v760_v54 }
 0x198   : > { %v844_v53 = vpop.f32.mrf.mxu3 }
 0x199   : > { %v845_v55 = vadd.f32 %v844_v53, %v818_v52  ;;  %v821_v57 = vpop.f32.mrf.mxu2 }
 0x19a   : > { %v822_v62 = vadd.f32 %v821_v57, %v791_v60 }
 0x19b   : > { %v867_v61 = vand.u32 4294901760, %v845_v55 }
 0x19d   : > { %v899_v5 = vsub.f32 %v845_v55, %v867_v61 }
 0x19f   : > { %v900_v15 = vand.u32 4294901760, %v899_v5 }
 0x1a0   : > { %v848_v0 = vpop.f32.mrf.mxu3 }
 0x1a1   : > { %v849_v7 = vadd.f32 %v848_v0, %v822_v62  ;;  %v901_v20 = vsub.f32 %v899_v5, %v900_v15 }
 0x1a3   : > { %v865_v8 = vand.u32 4294901760, %v849_v7  ;;  %v902_v27 = vand.u32 4294901760, %v901_v20 }
 0x1a5   : > { %v893_v12 = vsub.f32 %v849_v7, %v865_v8  ;;  %866 = vmatpush.msra.mxu0 %v865_v8  ;;  %1002 = vmatpush.msrb.mxu3 %v865_v8 }
 0x1a7   : > { %v894_v17 = vand.u32 4294901760, %v893_v12  ;;  %868 = vmatpush.msra.mxu0 %v867_v61  ;;  %1004 = vmatpush.msrb.mxu3 %v867_v61 }
 0x1a8   : > { %874 = vmatmul.f32.vlgmr.msra.gmra.mxu0 %v2707_v59  ;;  %1006 = vmatmul.f32.vlgmr.msrb.gmra.mxu3 %v2691_v36 }
 0x1a9   : > { %v895_v19 = vsub.f32 %v893_v12, %v894_v17  ;;  %925 = vmatpush.msrb.mxu0 %v893_v12  ;;  %977 = vmatpush.msrb.mxu2 %v894_v17  ;;  %v1367_v17 = vmul.f32 %v2701_v50, %v2701_v50 }
 0x1aa   : > { %1134 = vmatpush.msra.mxu3 %v2648_v3 }
 0x1ab   : > { %928 = vmatpush.msrb.mxu0 %v899_v5  ;;  %981 = vmatpush.msrb.mxu2 %v900_v15  ;;  %v896_v24 = vand.u32 4294901760, %v895_v19 }
 0x1ac   : > { %983 = vmatmul.f32.vlgmr.msrb.gmra.mxu2 %v2691_v36  ;;  %1136 = vmatpush.msra.mxu3 %v2650_v4 }
 0x1ad   : > { %1033 = vmatpush.msra.mxu0 %v2648_v3  ;;  %897 = vmatpush.msra.mxu1 %v896_v24 }
 0x1ae   : > { %1104 = vmatpush.msra.mxu2 %v2659_v9 }
 0x1af   : > { %1035 = vmatpush.msra.mxu0 %v2650_v4  ;;  %903 = vmatpush.msra.mxu1 %v902_v27 }
 0x1b0   : > { %1107 = vmatpush.msra.mxu2 %v2663_v10  ;;  %905 = vmatmul.f32.vlgmr.msra.gmra.mxu1 %v2691_v36 }
 0x1b1   : > { %931 = vmatmul.f32.vlgmr.msrb.gmra.mxu0 %v2694_v43  ;;  %950 = vmatpush.msrb.mxu1 %v865_v8 }
 0x1b2   : > { %1140 = vmatmul.f32.vlgmr.msra.gmra.mxu3 %v1038_v25  ;;  %1167 = vmatpush.msrb.mxu0 %v2669_v13 }
 0x1b3   : > { %952 = vmatpush.msrb.mxu1 %v867_v61 }
 0x1b4   : > { %1110 = vmatmul.f32.vlgmr.msra.gmra.mxu2 %v1037_v18  ;;  %1171 = vmatpush.msrb.mxu0 %v2672_v14 }
 0x1b5   : > { %1072 = vmatpush.msra.mxu1 %v2681_v21 }
 0x1b7   : > { %1078 = vmatpush.msra.mxu1 %v2683_v22 }
 0x1b8   : > { %956 = vmatmul.f32.vlgmr.msrb.gmra.mxu1 %v2697_v47 }
 0x1b9   : > { %1041 = vmatmul.f32.vlgmr.msra.gmra.mxu0 %v1040_v30  ;;  %1196 = vmatpush.msrb.mxu1 %v2648_v3 }
 0x1ba   : > { %1146 = vmatmul.f32.gmra.mxu3 %v1046_v31  ;;  %v1368_v31 = vmul.f32 %v2711_v63, %v2711_v63 }
 0x1bb   : > { %1198 = vmatpush.msrb.mxu1 %v2650_v4 }
 0x1bc   : > { %1115 = vmatmul.f32.gmra.mxu2 %v1045_v29 }
 0x1c0   : > { %1080 = vmatmul.f32.vlgmr.msra.gmra.mxu1 %v1036_v11 }
 0x1c1   : > { %1049 = vmatmul.f32.gmra.mxu0 %v1048_v33 }
 0x1c8   : > { %1084 = vmatmul.f32.gmra.mxu1 %v1044_v26 }
 0x1c9   : > { %1173 = vmatmul.f32.vlgmr.msrb.gmra.mxu0 %v1036_v11 }
 0x1d0   : > { %1200 = vmatmul.f32.vlgmr.msrb.gmra.mxu1 %v1036_v11 }
 0x1d1   : > { %1177 = vmatmul.f32.gmra.mxu0 %v1044_v26 }
 0x1d8   : > { %1204 = vmatmul.f32.gmra.mxu1 %v1044_v26  ;;  %v1370_v26 = vsel %vm296_vm0, %v1367_v17, 0 }
 0x1d9   : > { %v1393_v28 = vand.u32 4294901760, %v1370_v26 }
 0x1db   : > { %v1394_v33 = vsub.f32 %v1370_v26, %v1393_v28 }
 0x225   : > { %v875_v34 = vpop.f32.mrf.mxu0 }
 0x22b   : > { %v1007_v46 = vpop.f32.mrf.mxu3 }
 0x22d   : > { %v906_v35 = vpop.f32.mrf.mxu1 }
 0x22e   : > { %v932_v38 = vpop.f32.mrf.mxu0  ;;  %v907_v39 = vadd.f32 %v906_v35, %v875_v34 }
 0x22f   : > { %v984_v41 = vpop.f32.mrf.mxu2 }
 0x230   : > { %v933_v40 = vadd.f32 %v932_v38, %v907_v39  ;;  %v1373_v38 = vsel %vm296_vm0, %v1368_v31, 0 }
 0x235   : > { %v957_v42 = vpop.f32.mrf.mxu1  ;;  %v1141_v60 = vpop.f32.mrf.mxu3 }
 0x236   : > { %v1042_v44 = vpop.f32.mrf.mxu0  ;;  %v958_v45 = vadd.f32 %v957_v42, %v933_v40  ;;  %v1395_v40 = vand.u32 4294901760, %v1394_v33 }
 0x237   : > { %v1111_v57 = vpop.f32.mrf.mxu2 }
 0x238   : > { %v985_v48 = vadd.f32 %v984_v41, %v958_v45  ;;  %v1401_v41 = vand.u32 4294901760, %v1373_v38 }
 0x23a   : > { %v1008_v49 = vadd.f32 %v1007_v46, %v985_v48  ;;  %v1402_v45 = vsub.f32 %v1373_v38, %v1401_v41 }
 0x23c   : > { %v2763_v52 = vmul.f32 %v1008_v49, %v1008_v49  ;;  %v2766_v53 = vmul.f32 %v1008_v49, %v2733_v37  ;;  %v1403_v48 = vand.u32 4294901760, %v1402_v45 }
 0x23d   : > { %v1081_v55 = vpop.f32.mrf.mxu1  ;;  %v1147_v15 = vpop.f32.mrf.mxu3 }
 0x23e   : > { %v1050_v54 = vpop.f32.mrf.mxu0  ;;  %v2770_v56 = vadd.f32 %v2763_v52, %v2761_v51  ;;  %v1082_v58 = vadd.f32 %v1081_v55, %v1042_v44  ;;  %v1396_v44 = vsub.f32 %v1394_v33, %v1395_v40  ;;  %v1404_v49 = vsub.f32 %v1402_v45, %v1403_v48 }
 0x23f   : > { %v1116_v7 = vpop.f32.mrf.mxu2 }
 0x240   : > { %v1112_v62 = vadd.f32 %v1111_v57, %v1082_v58  ;;  %v1397_v46 = vand.u32 4294901760, %v1396_v44 }
 0x242   : > { %v1142_v1 = vadd.f32 %v1141_v60, %v1112_v62 }
 0x245   : > { %v1085_v61 = vpop.f32.mrf.mxu1 }
 0x246   : > { %v1174_v0 = vpop.f32.mrf.mxu0  ;;  %v1086_v5 = vadd.f32 %v1085_v61, %v1050_v54  ;;  %v1405_v54 = vand.u32 4294901760, %v1404_v49  ;;  %v1725_v49 = vmul.f32 %v2711_v63, %v2654_v6 }
 0x247   : > { %v1175_v8 = vadd.f32 %v1174_v0, %v1142_v1 }
 0x248   : > { %v1117_v12 = vadd.f32 %v1116_v7, %v1086_v5 }
 0x24a   : > { %v1148_v18 = vadd.f32 %v1147_v15, %v1117_v12 }
 0x24d   : > { %v1201_v11 = vpop.f32.mrf.mxu1 }
 0x24e   : > { %v1202_v37 = vadd.f32 %v1201_v11, %v1175_v8  ;;  %v1178_v16 = vpop.f32.mrf.mxu0 }
 0x24f   : > { %v1179_v20 = vadd.f32 %v1178_v16, %v1148_v18 }
 0x250   : > { %v1224_v19 = vand.u32 4294901760, %v1202_v37 }
 0x252   : > { %v1256_v24 = vsub.f32 %v1202_v37, %v1224_v19 }
 0x254   : > { %v1257_v30 = vand.u32 4294901760, %v1256_v24 }
 0x255   : > { %v1205_v23 = vpop.f32.mrf.mxu1 }
 0x256   : > { %v1206_v25 = vadd.f32 %v1205_v23, %v1179_v20  ;;  %v1258_v35 = vsub.f32 %v1256_v24, %v1257_v30 }
 0x258   : > { %v1222_v27 = vand.u32 4294901760, %v1206_v25  ;;  %v1259_v42 = vand.u32 4294901760, %v1258_v35 }
 0x25a   : > { %v1250_v29 = vsub.f32 %v1206_v25, %v1222_v27  ;;  %1223 = vmatpush.msrb.mxu2 %v1222_v27  ;;  %1359 = vmatpush.msra.mxu1 %v1222_v27 }
 0x25c   : > { %v1251_v32 = vand.u32 4294901760, %v1250_v29  ;;  %1225 = vmatpush.msrb.mxu2 %v1224_v19  ;;  %1361 = vmatpush.msra.mxu1 %v1224_v19 }
 0x25d   : > { %1231 = vmatmul.f32.vlgmr.msrb.gmra.mxu2 %v2707_v59  ;;  %1363 = vmatmul.f32.vlgmr.msra.gmra.mxu1 %v2691_v36 }
 0x25e   : > { %v1252_v34 = vsub.f32 %v1250_v29, %v1251_v32  ;;  %1282 = vmatpush.msra.mxu2 %v1250_v29  ;;  %1334 = vmatpush.msra.mxu0 %v1251_v32 }
 0x25f   : > { %1491 = vmatpush.msrb.mxu1 %v2648_v3 }
 0x260   : > { %1285 = vmatpush.msra.mxu2 %v1256_v24  ;;  %1338 = vmatpush.msra.mxu0 %v1257_v30  ;;  %v1253_v39 = vand.u32 4294901760, %v1252_v34 }
 0x261   : > { %1340 = vmatmul.f32.vlgmr.msra.gmra.mxu0 %v2691_v36  ;;  %1493 = vmatpush.msrb.mxu1 %v2650_v4 }
 0x262   : > { %1390 = vmatpush.msrb.mxu2 %v2648_v3  ;;  %1254 = vmatpush.msrb.mxu3 %v1253_v39 }
 0x263   : > { %1461 = vmatpush.msrb.mxu0 %v2659_v9 }
 0x264   : > { %1392 = vmatpush.msrb.mxu2 %v2650_v4  ;;  %1260 = vmatpush.msrb.mxu3 %v1259_v42 }
 0x265   : > { %1464 = vmatpush.msrb.mxu0 %v2663_v10  ;;  %1262 = vmatmul.f32.vlgmr.msrb.gmra.mxu3 %v2691_v36 }
 0x266   : > { %1288 = vmatmul.f32.vlgmr.msra.gmra.mxu2 %v2694_v43  ;;  %1307 = vmatpush.msra.mxu3 %v1222_v27 }
 0x267   : > { %1524 = vmatpush.msra.mxu2 %v2669_v13  ;;  %1497 = vmatmul.f32.vlgmr.msrb.gmra.mxu1 %v1395_v40 }
 0x268   : > { %1309 = vmatpush.msra.mxu3 %v1224_v19 }
 0x269   : > { %1528 = vmatpush.msra.mxu2 %v2672_v14  ;;  %1467 = vmatmul.f32.vlgmr.msrb.gmra.mxu0 %v1394_v33  ;;  %v1724_v33 = vmul.f32 %v2701_v50, %v2646_v2 }
 0x26a   : > { %1429 = vmatpush.msrb.mxu3 %v2681_v21 }
 0x26b   : > { %v1727_v40 = vsel %vm296_vm0, %v1724_v33, 0 }
 0x26c   : > { %1435 = vmatpush.msrb.mxu3 %v2683_v22 }
 0x26d   : > { %1313 = vmatmul.f32.vlgmr.msra.gmra.mxu3 %v2697_v47 }
 0x26e   : > { %1398 = vmatmul.f32.vlgmr.msrb.gmra.mxu2 %v1397_v46  ;;  %1553 = vmatpush.msra.mxu3 %v2648_v3 }
 0x26f   : > { %1503 = vmatmul.f32.gmra.mxu1 %v1403_v48 }
 0x270   : > { %1555 = vmatpush.msra.mxu3 %v2650_v4 }
 0x271   : > { %1472 = vmatmul.f32.gmra.mxu0 %v1402_v45  ;;  %v1750_v45 = vand.u32 4294901760, %v1727_v40 }
 0x273   : > { %v1751_v2 = vsub.f32 %v1727_v40, %v1750_v45 }
 0x275   : > { %1437 = vmatmul.f32.vlgmr.msrb.gmra.mxu3 %v1393_v28  ;;  %v1752_v6 = vand.u32 4294901760, %v1751_v2 }
 0x276   : > { %1406 = vmatmul.f32.gmra.mxu2 %v1405_v54 }
 0x27d   : > { %1441 = vmatmul.f32.gmra.mxu3 %v1401_v41 }
 0x27e   : > { %1530 = vmatmul.f32.vlgmr.msra.gmra.mxu2 %v1393_v28 }
 0x285   : > { %1557 = vmatmul.f32.vlgmr.msra.gmra.mxu3 %v1393_v28 }
 0x286   : > { %1534 = vmatmul.f32.gmra.mxu2 %v1401_v41 }
 0x28d   : > { %1561 = vmatmul.f32.gmra.mxu3 %v1401_v41 }
 0x2da   : > { %v1364_v7 = vpop.f32.mrf.mxu1 }
 0x2de   : > { %v1341_v62 = vpop.f32.mrf.mxu0 }
 0x2e0   : > { %v1232_v55 = vpop.f32.mrf.mxu2 }
 0x2e4   : > { %v1498_v18 = vpop.f32.mrf.mxu1 }
 0x2e6   : > { %v1468_v16 = vpop.f32.mrf.mxu0 }
 0x2e8   : > { %v1263_v57 = vpop.f32.mrf.mxu3 }
 0x2e9   : > { %v1289_v58 = vpop.f32.mrf.mxu2  ;;  %v1264_v60 = vadd.f32 %v1263_v57, %v1232_v55  ;;  %v1730_v57 = vsel %vm296_vm0, %v1725_v49, 0 }
 0x2ea   : > { %v1758_v63 = vand.u32 4294901760, %v1730_v57 }
 0x2eb   : > { %v1290_v61 = vadd.f32 %v1289_v58, %v1264_v60 }
 0x2ec   : > { %v1504_v31 = vpop.f32.mrf.mxu1 }
 0x2ee   : > { %v1473_v26 = vpop.f32.mrf.mxu0 }
 0x2f0   : > { %v1314_v0 = vpop.f32.mrf.mxu3 }
 0x2f1   : > { %v1399_v1 = vpop.f32.mrf.mxu2  ;;  %v1315_v5 = vadd.f32 %v1314_v0, %v1290_v61  ;;  %v1753_v61 = vsub.f32 %v1751_v2, %v1752_v6 }
 0x2f3   : > { %v1342_v8 = vadd.f32 %v1341_v62, %v1315_v5  ;;  %v1759_v62 = vsub.f32 %v1730_v57, %v1758_v63  ;;  %v1754_v0 = vand.u32 4294901760, %v1753_v61 }
 0x2f5   : > { %v2796_v11 = vadd.f32 %v1364_v7, %v1342_v8 }
 0x2f7   : > { %v2084_v12 = vsub.f32 %v2796_v11, %v2761_v51 }
 0x2f8   : > { %v1438_v15 = vpop.f32.mrf.mxu3 }
 0x2f9   : > { %v1407_v37 = vpop.f32.mrf.mxu2  ;;  %v1439_v17 = vadd.f32 %v1438_v15, %v1399_v1 }
 0x2fb   : > { %v1469_v20 = vadd.f32 %v1468_v16, %v1439_v17 }
 0x2fd   : > { %v1499_v24 = vadd.f32 %v1498_v18, %v1469_v20 }
 0x300   : > { %v1442_v19 = vpop.f32.mrf.mxu3 }
 0x301   : > { %v1531_v23 = vpop.f32.mrf.mxu2  ;;  %v1443_v25 = vadd.f32 %v1442_v19, %v1407_v37 }
 0x302   : > { %v1532_v27 = vadd.f32 %v1531_v23, %v1499_v24  ;;  %v2093_v23 = vadd.f32 0.0001, %v2770_v56 }
 0x303   : > { %v1474_v29 = vadd.f32 %v1473_v26, %v1443_v25 }
 0x305   : > { %v1505_v34 = vadd.f32 %v1504_v31, %v1474_v29 }
 0x308   : > { %v1558_v28 = vpop.f32.mrf.mxu3 }
 0x309   : > { %v1559_v30 = vadd.f32 %v1558_v28, %v1532_v27  ;;  %v1535_v32 = vpop.f32.mrf.mxu2 }
 0x30a   : > { %v1536_v38 = vadd.f32 %v1535_v32, %v1505_v34 }
 0x30b   : > { %v1581_v35 = vand.u32 4294901760, %v1559_v30 }
 0x30d   : > { %v1613_v41 = vsub.f32 %v1559_v30, %v1581_v35 }
 0x30f   : > { %v1614_v48 = vand.u32 4294901760, %v1613_v41 }
 0x310   : > { %v1562_v39 = vpop.f32.mrf.mxu3 }
 0x311   : > { %v1563_v42 = vadd.f32 %v1562_v39, %v1536_v38  ;;  %v1615_v55 = vsub.f32 %v1613_v41, %v1614_v48 }
 0x313   : > { %v1579_v44 = vand.u32 4294901760, %v1563_v42  ;;  %v1616_v60 = vand.u32 4294901760, %v1615_v55 }
 0x315   : > { %v1607_v46 = vsub.f32 %v1563_v42, %v1579_v44  ;;  %1580 = vmatpush.msra.mxu0 %v1579_v44  ;;  %1716 = vmatpush.msrb.mxu3 %v1579_v44 }
 0x317   : > { %v1608_v54 = vand.u32 4294901760, %v1607_v46  ;;  %1582 = vmatpush.msra.mxu0 %v1581_v35  ;;  %1718 = vmatpush.msrb.mxu3 %v1581_v35 }
 0x318   : > { %1588 = vmatmul.f32.vlgmr.msra.gmra.mxu0 %v2707_v59  ;;  %1720 = vmatmul.f32.vlgmr.msrb.gmra.mxu3 %v2691_v36 }
 0x319   : > { %v1609_v50 = vsub.f32 %v1607_v46, %v1608_v54  ;;  %1639 = vmatpush.msrb.mxu0 %v1607_v46  ;;  %1691 = vmatpush.msrb.mxu2 %v1608_v54 }
 0x31a   : > { %1848 = vmatpush.msra.mxu3 %v2648_v3 }
 0x31b   : > { %1642 = vmatpush.msrb.mxu0 %v1613_v41  ;;  %1695 = vmatpush.msrb.mxu2 %v1614_v48  ;;  %v1610_v58 = vand.u32 4294901760, %v1609_v50 }
 0x31c   : > { %1697 = vmatmul.f32.vlgmr.msrb.gmra.mxu2 %v2691_v36  ;;  %1850 = vmatpush.msra.mxu3 %v2650_v4 }
 0x31d   : > { %1747 = vmatpush.msra.mxu0 %v2648_v3  ;;  %1611 = vmatpush.msra.mxu1 %v1610_v58 }
 0x31e   : > { %1818 = vmatpush.msra.mxu2 %v2659_v9  ;;  %v1760_v9 = vand.u32 4294901760, %v1759_v62 }
 0x31f   : > { %1749 = vmatpush.msra.mxu0 %v2650_v4  ;;  %1617 = vmatpush.msra.mxu1 %v1616_v60 }
 0x320   : > { %1821 = vmatpush.msra.mxu2 %v2663_v10  ;;  %1619 = vmatmul.f32.vlgmr.msra.gmra.mxu1 %v2691_v36  ;;  %v1761_v10 = vsub.f32 %v1759_v62, %v1760_v9 }
 0x321   : > { %1645 = vmatmul.f32.vlgmr.msrb.gmra.mxu0 %v2694_v43  ;;  %1664 = vmatpush.msrb.mxu1 %v1579_v44 }
 0x322   : > { %1854 = vmatmul.f32.vlgmr.msra.gmra.mxu3 %v1752_v6  ;;  %1881 = vmatpush.msrb.mxu0 %v2669_v13  ;;  %v1762_v13 = vand.u32 4294901760, %v1761_v10 }
 0x323   : > { %1666 = vmatpush.msrb.mxu1 %v1581_v35 }
 0x324   : > { %1824 = vmatmul.f32.vlgmr.msra.gmra.mxu2 %v1751_v2  ;;  %1885 = vmatpush.msrb.mxu0 %v2672_v14 }
 0x325   : > { %1786 = vmatpush.msra.mxu1 %v2681_v21 }
 0x327   : > { %1792 = vmatpush.msra.mxu1 %v2683_v22 }
 0x328   : > { %1670 = vmatmul.f32.vlgmr.msrb.gmra.mxu1 %v2697_v47 }
 0x329   : > { %1755 = vmatmul.f32.vlgmr.msra.gmra.mxu0 %v1754_v0  ;;  %1910 = vmatpush.msrb.mxu1 %v2648_v3 }
 0x32a   : > { %1860 = vmatmul.f32.gmra.mxu3 %v1760_v9 }
 0x32b   : > { %1912 = vmatpush.msrb.mxu1 %v2650_v4 }
 0x32c   : > { %1829 = vmatmul.f32.gmra.mxu2 %v1759_v62 }
 0x330   : > { %1794 = vmatmul.f32.vlgmr.msra.gmra.mxu1 %v1750_v45 }
 0x331   : > { %1763 = vmatmul.f32.gmra.mxu0 %v1762_v13 }
 0x338   : > { %1798 = vmatmul.f32.gmra.mxu1 %v1758_v63 }
 0x339   : > { %1887 = vmatmul.f32.vlgmr.msrb.gmra.mxu0 %v1750_v45 }
 0x340   : > { %1914 = vmatmul.f32.vlgmr.msrb.gmra.mxu1 %v1750_v45 }
 0x341   : > { %1891 = vmatmul.f32.gmra.mxu0 %v1758_v63 }
 0x348   : > { %1918 = vmatmul.f32.gmra.mxu1 %v1758_v63 }
 0x395   : > { %v1589_v14 = vpop.f32.mrf.mxu0 }
 0x39b   : > { %v1721_v15 = vpop.f32.mrf.mxu3 }
 0x39d   : > { %v1620_v21 = vpop.f32.mrf.mxu1 }
 0x39e   : > { %v1646_v22 = vpop.f32.mrf.mxu0  ;;  %v1621_v1 = vadd.f32 %v1620_v21, %v1589_v14 }
 0x39f   : > { %v1698_v7 = vpop.f32.mrf.mxu2 }
 0x3a0   : > { %v1647_v5 = vadd.f32 %v1646_v22, %v1621_v1 }
 0x3a5   : > { %v1671_v8 = vpop.f32.mrf.mxu1  ;;  %v1855_v28 = vpop.f32.mrf.mxu3 }
 0x3a6   : > { %v1756_v37 = vpop.f32.mrf.mxu0  ;;  %v1672_v3 = vadd.f32 %v1671_v8, %v1647_v5 }
 0x3a7   : > { %v1825_v25 = vpop.f32.mrf.mxu2 }
 0x3a8   : > { %v1699_v4 = vadd.f32 %v1698_v7, %v1672_v3 }
 0x3aa   : > { %v1722_v16 = vadd.f32 %v1721_v15, %v1699_v4 }
 0x3ac   : > { %v2085_v17 = vsub.f32 %v1722_v16, %v2763_v52 }
 0x3ad   : > { %v1795_v19 = vpop.f32.mrf.mxu1  ;;  %v1861_v51 = vpop.f32.mrf.mxu3 }
 0x3ae   : > { %v1764_v18 = vpop.f32.mrf.mxu0  ;;  %v2094_v20 = vadd.f32 %v2085_v17, %v2084_v12  ;;  %v1796_v27 = vadd.f32 %v1795_v19, %v1756_v37 }
 0x3af   : > { %v1830_v52 = vpop.f32.mrf.mxu2 }
 0x3b0   : > { %v2095_v24 = vadd.f32 0.0009, %v2094_v20  ;;  %v1826_v30 = vadd.f32 %v1825_v25, %v1796_v27 }
 0x3b2   : > { %v2829_v26 = vmul.f32 %v2095_v24, %v2093_v23  ;;  %v1856_v32 = vadd.f32 %v1855_v28, %v1826_v30 }
 0x3b4   : > { %2316 = vrcp.f32 %v2829_v26  ;;  %v2108_v1 = vand.u32 2147483648, %v2829_v26  ;;  %vm2102_vm2 = vweird.f32 %v2829_v26  ;;  %v2106_v7 = vand.u32 2147483647, %v2829_v26 }
 0x3b5   : > { %v1799_v29 = vpop.f32.mrf.mxu1 }
 0x3b6   : > { %v1888_v31 = vpop.f32.mrf.mxu0  ;;  %v1800_v33 = vadd.f32 %v1799_v29, %v1764_v18  ;;  %v2109_v15 = vor.u32 1.1754944e-38, %v2108_v1  ;;  %vm2107_vm4 = vcmp.eq.f32.partialorder %v2106_v7, 8.507059e+37 }
 0x3b7   : > { %v1889_v34 = vadd.f32 %v1888_v31, %v1856_v32 }
 0x3b8   : > { %v1831_v38 = vadd.f32 %v1830_v52, %v1800_v33 }
 0x3ba   : > { %v1862_v12 = vadd.f32 %v1861_v51, %v1831_v38  ;;  %v2317_v57 = vpop.eup %2316 }
 0x3bb   : > { %v2098_v63 = vmul.f32 %v2317_v57, %v2829_v26  ;;  %vm2103_vm1 = vweird.f32 %v2317_v57 }
 0x3bc   : > { %vm2104_vm3 = vmor %vm2102_vm2, %vm2103_vm1 }
 0x3bd   : > { %v1915_v35 = vpop.f32.mrf.mxu1  ;;  %v2099_v62 = vsub.f32 1.0, %v2098_v63 }
 0x3be   : > { %v1916_v39 = vadd.f32 %v1915_v35, %v1889_v34  ;;  %v1892_v11 = vpop.f32.mrf.mxu0 }
 0x3bf   : > { %v1893_v40 = vadd.f32 %v1892_v11, %v1862_v12 }
 0x3c0   : > { %v1938_v56 = vand.u32 4294901760, %v1916_v39 }
 0x3c2   : > { %v1970_v42 = vsub.f32 %v1916_v39, %v1938_v56 }
 0x3c4   : > { %v1971_v48 = vand.u32 4294901760, %v1970_v42 }
 0x3c5   : > { %v1919_v41 = vpop.f32.mrf.mxu1 }
 0x3c6   : > { %v1920_v44 = vadd.f32 %v1919_v41, %v1893_v40  ;;  %v1972_v2 = vsub.f32 %v1970_v42, %v1971_v48 }
 0x3c8   : > { %v1936_v45 = vand.u32 4294901760, %v1920_v44  ;;  %v1973_v55 = vand.u32 4294901760, %v1972_v2 }
 0x3ca   : > { %v1964_v46 = vsub.f32 %v1920_v44, %v1936_v45  ;;  %1937 = vmatpush.msrb.mxu2 %v1936_v45  ;;  %2073 = vmatpush.msra.mxu1 %v1936_v45 }
 0x3cc   : > { %v1965_v49 = vand.u32 4294901760, %v1964_v46  ;;  %1939 = vmatpush.msrb.mxu2 %v1938_v56  ;;  %2075 = vmatpush.msra.mxu1 %v1938_v56 }
 0x3cd   : > { %2077 = vmatmul.f32.vlgmr.msra.gmra.mxu1 %v2691_v36  ;;  %1945 = vmatmul.f32.vlgmr.msrb.gmra.mxu2 %v2707_v59 }
 0x3ce   : > { %1996 = vmatpush.msra.mxu2 %v1964_v46  ;;  %v1966_v54 = vsub.f32 %v1964_v46, %v1965_v49  ;;  %2048 = vmatpush.msra.mxu0 %v1965_v49 }
 0x3d0   : > { %1999 = vmatpush.msra.mxu2 %v1970_v42  ;;  %2052 = vmatpush.msra.mxu0 %v1971_v48  ;;  %v1967_v50 = vand.u32 4294901760, %v1966_v54 }
 0x3d1   : > { %2054 = vmatmul.f32.vlgmr.msra.gmra.mxu0 %v2691_v36 }
 0x3d2   : > { %1968 = vmatpush.msrb.mxu3 %v1967_v50 }
 0x3d4   : > { %1974 = vmatpush.msrb.mxu3 %v1973_v55 }
 0x3d5   : > { %1976 = vmatmul.f32.vlgmr.msrb.gmra.mxu3 %v2691_v36  ;;  %2002 = vmatmul.f32.vlgmr.msra.gmra.mxu2 %v2694_v43  ;;  %v2100_v43 = vmul.f32 %v2317_v57, %v2099_v62 }
 0x3d6   : > { %2021 = vmatpush.msra.mxu3 %v1936_v45 }
 0x3d7   : > { %v2101_v22 = vadd.f32 %v2317_v57, %v2100_v43 }
 0x3d8   : > { %2023 = vmatpush.msra.mxu3 %v1938_v56 }
 0x3d9   : > { %v2105_v3 = vsel %vm2104_vm3, %v2317_v57, %v2101_v22 }
 0x3da   : > { %v2110_v16 = vsel %vm2107_vm4, %v2109_v15, %v2105_v3 }
 0x3dd   : > { %2027 = vmatmul.f32.vlgmr.msra.gmra.mxu3 %v2697_v47  ;;  %v2087_v47 = vmul.f32 2.0, %v2766_v53 }
 0x3df   : > { %v2088_v8 = vadd.f32 0.0001, %v2087_v47 }
 0x44a   : > { %v2078_v10 = vpop.f32.mrf.mxu1 }
 0x44e   : > { %v2055_v9 = vpop.f32.mrf.mxu0 }
 0x450   : > { %v1946_v59 = vpop.f32.mrf.mxu2 }
 0x458   : > { %v1977_v58 = vpop.f32.mrf.mxu3  ;;  %v2003_v60 = vpop.f32.mrf.mxu2 }
 0x459   : > { %v1978_v6 = vadd.f32 %v1977_v58, %v1946_v59 }
 0x45b   : > { %v2004_v61 = vadd.f32 %v2003_v60, %v1978_v6 }
 0x460   : > { %v2028_v0 = vpop.f32.mrf.mxu3 }
 0x461   : > { %v2029_v36 = vadd.f32 %v2028_v0, %v2004_v61 }
 0x463   : > { %v2056_v13 = vadd.f32 %v2055_v9, %v2029_v36 }
 0x465   : > { %v2079_v14 = vadd.f32 %v2078_v10, %v2056_v13 }
 0x467   : > { %v2086_v21 = vsub.f32 %v2079_v14, %v2766_v53 }
 0x469   : > { %v2089_v5 = vmul.f32 2.0, %v2086_v21 }
 0x46b   : > { %v2090_v37 = vadd.f32 0.0009, %v2089_v5 }
 0x46d   : > { %v2091_v4 = vmul.f32 %v2090_v37, %v2088_v8 }
 0x46f   : > { %v2111_v53 = vmul.f32 %v2110_v16, %v2091_v4 }
 0x471   : > { %v2113_v17 = vsel %vm2112_vm5, %v2111_v53, 0.0 }
 0x472   : > { %2114 = vadd.xlane.f32.xlu0 %v2113_v17 }
 0x4e5   : > { %v2115_v18 = vpop.xlane.xlu0 %2114 }
 0x4e6   : > { %v2116_v19 = vrot.slane %v2115_v18, 4 }
 0x4e8   : > { %v2117_v20 = vadd.f32 %v2116_v19, %v2115_v18 }
 0x4ea   : > { %v2118_v23 = vrot.slane %v2117_v20, 2 }
 0x4ec   : > { %v2119_v24 = vadd.f32 %v2118_v23, %v2117_v20 }
 0x4ee   : > { %v2120_v25 = vrot.slane %v2119_v24, 1 }
 0x4f0   : > { %v2121_v26 = vadd.f32 %v2120_v25, %v2119_v24 }
 0x4f2   : > { %2247 = vpush %v2121_v26 }
 0x523   : > { %s2248_s20 = spop %2247 }
 0x524   : > { %s2123_s13 = smul.f32 0.027777778, %s2248_s20 }
 0x526   : > { %v2124_v27 = vstv %s2123_s13 }
 0x527   : > { %2125 = vst [vmem:[%s288_s10] sm:$0x1] %v2124_v27 }
 0x528 PF: > { %p18_p4 = scmp.ge.s32.totalorder %s2564_s8, 8   ;;  %s2870_s15 = smov %s2476_s16 }
 0x529   : > { %s2871_s16 = smov %s2480_s17  ;;  %s2872_s17 = smov %s2575_s12 }
 0x52a   : > { %s2873_s18 = smov %s2564_s8  ;;  %20 = sbr.rel (!%p18_p4) target bundleno = 6 (0x6), region = 97 }
 0x52f   :  { %2143 = vsyncpa [#allocation3], 1 }
 0x530   :  { %2145 = vsyncpa [#allocation3 + $0x1], 1 }
 0x531   :  { %2146 = vsyncpa [#allocation5], 1 }
 0x532   :  { %2148 = vsyncpa [#allocation5 + $0x1], 1 }
 0x533   :  { %2149 = vsyncpa [#allocation8], 1 }

</bundles_post_ra>
